<compile_context>
chip_gen: v7x
topology: tpu7x:2x2x1
jax: 0.10.0
libtpu: 0.0.40
codegen_flags: <defaults>
</compile_context>

<pallas_src>
import functools

import jax
import jax.numpy as jnp
from jax import lax
from jax.experimental import pallas as pl
from jax.experimental.pallas import tpu as pltpu

LANES = 128
SUBLANES = 8
PAD_MULTIPLE = LANES * SUBLANES          # flat pad granularity (< 1024 wasted slots)
INPUT_VMEM_BUDGET = 16 * 1024 * 1024     # bytes for the double-buffered input stream
LOG_CLAMP = -100.0                       # PyTorch BCELoss clamps each log term at -100


def _num_tensorcores() -> int:
    """TensorCores per chip (2 on v7x, 1 on v5e/v6e). Defensive: falls back to 1."""
    try:
        info = pltpu.get_tpu_info()
        for name in ("num_cores", "num_tensorcores", "tensorcores_per_chip",
                     "tensor_cores_per_chip", "cores_per_chip", "core_count"):
            v = getattr(info, name, None)
            if isinstance(v, int) and 1 <= v <= 8:
                return v
    except Exception:
        pass
    try:
        kind = jax.devices()[0].device_kind.lower()
        if "v7" in kind or "7x" in kind:
            return 2
    except Exception:
        pass
    return 1


_NUM_TC = _num_tensorcores()


def _make_bce_kernel(*, block_rows, blocks_per_split, total_blocks,
                     full_blocks, tail_valid, hard_labels):
    """Build a BCE partial-sum kernel closed over static tiling parameters."""
    gating = (tail_valid != 0) or (total_blocks != full_blocks)

    def block_partial(p_ref, t_ref, mask=None):
        p = p_ref[...].astype(jnp.float32)
        t = t_ref[...].astype(jnp.float32)
        # Robustness: bf16 rounding (or caller error) can push p slightly outside
        # [0,1]; clip so log(1 - p) can never produce NaN.
        p = jnp.clip(p, 0.0, 1.0)
        if mask is not None:
            # Neutralize padded / out-of-bounds slots BEFORE the logs.
            p = jnp.where(mask, p, jnp.float32(0.5))
        if hard_labels:
            # Single-log fast path for 0/1 targets: halves EUP transcendental work.
            chosen = jnp.where(t > 0.5, p, 1.0 - p)
            loss = -jnp.maximum(jnp.log(chosen), LOG_CLAMP)
        else:
            # TODO(synk): on v6e/v7x the two logs could run in bf16 on the EUP
            # (~2x transcendental throughput) at ~1e-3 loss tolerance; kept f32
            # here so numerics match the reference on all generations (incl. v5e).
            log_p = jnp.maximum(jnp.log(p), LOG_CLAMP)
            log_1mp = jnp.maximum(jnp.log(1.0 - p), LOG_CLAMP)
            loss = -(t * log_p + (1.0 - t) * log_1mp)
        if mask is not None:
            loss = jnp.where(mask, loss, 0.0)
        # Lane/sublane-parallel (8,128) partial sums: pure VALU vreg adds; the one
        # scalar reduce happens in the JAX wrapper after the kernel.
        return loss.reshape(block_rows // SUBLANES, SUBLANES, LANES).sum(axis=0)

    def kernel(p_ref, t_ref, out_ref):
        i = pl.program_id(1)   # row-block axis ("arbitrary", accumulated)

        @pl.when(i == 0)
        def _init():
            out_ref[...] = jnp.zeros_like(out_ref)

        if not gating:
            # No padding, no duplicate split blocks: unconditional fast path.
            out_ref[...] += block_partial(p_ref, t_ref)[None]
            return

        gb = pl.program_id(0) * blocks_per_split + i   # logical global block id

        if full_blocks > 0:
            @pl.when(gb < full_blocks)
            def _interior():
                # Fully-valid interior blocks: no iota, no mask, no selects.
                out_ref[...] += block_partial(p_ref, t_ref)[None]

        if tail_valid > 0:
            @pl.when(gb == full_blocks)
            def _tail():
                # Only the single tail block pays for the validity mask.
                row_ids = lax.broadcasted_iota(jnp.int32, (block_rows, LANES), 0)
                lane_ids = lax.broadcasted_iota(jnp.int32, (block_rows, LANES), 1)
                mask = (row_ids * LANES + lane_ids) < tail_valid
                out_ref[...] += block_partial(p_ref, t_ref, mask)[None]

        # gb > full_blocks (duplicate clamped split blocks): compute skipped entirely.

    return kernel


@functools.partial(jax.jit, static_argnames=("reduction", "hard_labels"))
def bce_loss(predictions, targets, reduction="mean", hard_labels=False):
    """Flattened binary cross-entropy, matching nn.BCELoss(reduction=reduction)."""
    p_flat = predictions.reshape(-1)   # keep caller dtype (no f32 upcast in HBM)
    t_flat = targets.reshape(-1)
    n = p_flat.shape[0]

    # TODO(synk): optional HBM-bandwidth lever — cast f32 inputs to bf16 here
    # (halves bytes/element) when the caller's tolerance allows; off by default.

    # Tiny (< 1024 element) pad so the flat array reshapes to (rows, 128) with
    # rows % 8 == 0 — keeps the (8,128) accumulator path and unmasked stores.
    # Padded slots are masked in-kernel, so the pad value is irrelevant.
    rem = n % PAD_MULTIPLE
    if rem:
        pad = PAD_MULTIPLE - rem
        p_flat = jnp.pad(p_flat, (0, pad))
        t_flat = jnp.pad(t_flat, (0, pad))
    rows = p_flat.shape[0] // LANES            # always a multiple of 8
    p2 = p_flat.reshape(rows, LANES)
    t2 = t_flat.reshape(rows, LANES)

    # Block size from an input-stream VMEM budget (both inputs, double-buffered):
    # f32+f32 -> 8192 rows (4 MiB/input/buffer); bf16+bf16 -> 16384 rows.
    per_row_bytes = LANES * (p2.dtype.itemsize + t2.dtype.itemsize)   # one buffer
    max_block_rows = max(SUBLANES,
                         (INPUT_VMEM_BUDGET // (2 * per_row_bytes)) // SUBLANES * SUBLANES)
    block_rows = min(rows, max_block_rows)
    num_row_blocks = -(-rows // block_rows)

    # Only split across cores on multi-TensorCore chips (v7x); on v5e/v6e the
    # split would just manufacture duplicate blocks and forced masking.
    n_split = _NUM_TC if (_NUM_TC > 1 and num_row_blocks >= _NUM_TC) else 1
    blocks_per_split = -(-num_row_blocks // n_split)
    total_blocks = n_split * blocks_per_split

    elems_per_block = block_rows * LANES
    full_blocks = n // elems_per_block              # blocks with no invalid slot
    tail_valid = n - full_blocks * elems_per_block  # valid elements in tail block

    kernel = _make_bce_kernel(
        block_rows=block_rows,
        blocks_per_split=blocks_per_split,
        total_blocks=total_blocks,
        full_blocks=full_blocks,
        tail_valid=tail_valid,
        hard_labels=hard_labels,
    )

    def in_index_map(c, i):
        # Clamp so a duplicate (skipped) split block never DMAs out of bounds;
        # its compute is skipped in-kernel.
        return (jnp.minimum(c * blocks_per_split + i, num_row_blocks - 1), 0)

    in_spec = pl.BlockSpec((block_rows, LANES), in_index_map)

    if n_split > 1:
        # CORE_PARALLEL actually shards the leading axis across v7x's two TCs;
        # plain "parallel" would leave it as a serial loop.
        dim_sem = (getattr(pltpu, "CORE_PARALLEL", "parallel"),
                   getattr(pltpu, "ARBITRARY", "arbitrary"))
    else:
        dim_sem = ("arbitrary", "arbitrary")

    # Explicit scoped-VMEM limit sized to the double-buffered input stream plus
    # headroom, so large blocks never collide with a chip's default limit.
    vmem_limit = int(2 * block_rows * per_row_bytes + (8 << 20))

    partials = pl.pallas_call(
        kernel,
        out_shape=jax.ShapeDtypeStruct((n_split, SUBLANES, LANES), jnp.float32),
        grid_spec=pltpu.PrefetchScalarGridSpec(
            num_scalar_prefetch=0,
            grid=(n_split, blocks_per_split),
            in_specs=[in_spec, in_spec],
            out_specs=pl.BlockSpec((1, SUBLANES, LANES), lambda c, i: (c, 0, 0)),
        ),
        compiler_params=pltpu.CompilerParams(
            dimension_semantics=dim_sem,
            vmem_limit_bytes=vmem_limit,
        ),
    )(p2, t2)

    total = jnp.sum(partials)
    if reduction == "mean":
        return total / jnp.float32(n)
    elif reduction == "sum":
        return total
    else:
        # TODO(synk): reduction='none' returns the unreduced per-element vector;
        # only 'mean'/'sum' are kernelized.
        raise NotImplementedError("reduction='none' not implemented in kernel")


def _bce_ref(p, t, reduction="mean"):
    """Plain-JAX reference (f32), matching PyTorch BCELoss."""
    p = p.reshape(-1).astype(jnp.float32)
    t = t.reshape(-1).astype(jnp.float32)
    log_p = jnp.maximum(jnp.log(p), -100.0)
    log_1mp = jnp.maximum(jnp.log(1.0 - p), -100.0)
    loss = -(t * log_p + (1.0 - t) * log_1mp)
    return jnp.mean(loss) if reduction == "mean" else jnp.sum(loss)


if __name__ == "__main__":
    key = jax.random.PRNGKey(0)
    kp, kt, kp2, kt2, kp3, kt3 = jax.random.split(key, 6)

    # Primary VAD-like case: batch=2, channels=4, spatial 16x16 probabilities.
    shape = (2, 4, 16, 16)
    preds = jax.nn.sigmoid(jax.random.normal(kp, shape, jnp.float32))
    targs = (jax.random.uniform(kt, shape) > 0.5).astype(jnp.float32)
    loss = bce_loss(preds, targs, reduction="mean")
    jax.block_until_ready(loss)
    ref = _bce_ref(preds, targs)
    assert jnp.allclose(loss, ref, atol=1e-5, rtol=1e-5), (loss, ref)

    # Hard-label single-log fast path must agree on 0/1 targets.
    loss_h = bce_loss(preds, targs, reduction="mean", hard_labels=True)
    assert jnp.allclose(loss_h, ref, atol=1e-5, rtol=1e-5), (loss_h, ref)

    # 'sum' reduction.
    loss_s = bce_loss(preds, targs, reduction="sum")
    ref_s = _bce_ref(preds, targs, reduction="sum")
    assert jnp.allclose(loss_s, ref_s, atol=1e-2, rtol=1e-5), (loss_s, ref_s)

    # Ragged case (n not a multiple of 1024, soft targets) -> in-kernel tail masking.
    shape2 = (3, 5, 7, 11)
    preds2 = jax.nn.sigmoid(jax.random.normal(kp2, shape2, jnp.float32))
    targs2 = jax.random.uniform(kt2, shape2)
    loss2 = bce_loss(preds2, targs2, reduction="mean")
    ref2 = _bce_ref(preds2, targs2)
    assert jnp.allclose(loss2, ref2, atol=1e-5, rtol=1e-5), (loss2, ref2)

    # Multi-block bf16 case: >16384 rows forces >1 grid step, a partial tail
    # block (gated mask path), and cross-step accumulation in the output block.
    shape3 = (2, 8200, 128)   # 2_099_200 elements -> rows = 16400
    preds3 = jax.nn.sigmoid(
        jax.random.normal(kp3, shape3, jnp.float32)).astype(jnp.bfloat16)
    targs3 = (jax.random.uniform(kt3, shape3) > 0.5).astype(jnp.bfloat16)
    loss3 = bce_loss(preds3, targs3, reduction="mean")
    ref3 = _bce_ref(preds3, targs3)
    assert jnp.allclose(loss3, ref3, atol=1e-3, rtol=1e-3), (loss3, ref3)

    jax.block_until_ready((loss, loss_h, loss_s, loss2, loss3))
    print("KERNEL_OK")
</pallas_src>

<mosaic_0001>
module attributes {stable_mosaic.version = 11 : i64} {
  func.func @kernel(%arg0: i32, %arg1: i32, %arg2: memref<16x128xf32, #tpu.memory_space<vmem>>, %arg3: memref<16x128xf32, #tpu.memory_space<vmem>>, %arg4: memref<1x8x128xf32, #tpu.memory_space<vmem>>) attributes {dimension_semantics = [#tpu.dimension_semantics<arbitrary>, #tpu.dimension_semantics<arbitrary>], iteration_bounds = array<i64: 1, 1>, scalar_prefetch = 0 : i64, scratch_operands = 0 : i64, tpu.core_type = #tpu.core_type<tc>, window_params = [{transform_indices = @transform_0, window_bounds = array<i64: 16, 128>}, {transform_indices = @transform_1, window_bounds = array<i64: 16, 128>}, {transform_indices = @transform_2, window_bounds = array<i64: 1, 8, 128>}]} {
    %c0_i32 = arith.constant 0 : i32
    %0 = arith.cmpi eq, %arg1, %c0_i32 : i32
    %1 = arith.extui %0 : i1 to i32
    %c0_i32_0 = arith.constant 0 : i32
    %2 = arith.cmpi ne, %1, %c0_i32_0 : i32
    scf.if %2 {
      %cst_17 = arith.constant 0.000000e+00 : f32
      %30 = vector.broadcast %cst_17 : f32 to vector<1x8x128xf32>
      %c0_18 = arith.constant 0 : index
      %c0_19 = arith.constant 0 : index
      %c0_20 = arith.constant 0 : index
      %31 = vector.load %arg4[%c0_18, %c0_19, %c0_20] : memref<1x8x128xf32, #tpu.memory_space<vmem>>, vector<1x8x128xf32>
      tpu.vector_store %arg4[%c0_18, %c0_19, %c0_20], %30 {strides = array<i32>} : memref<1x8x128xf32, #tpu.memory_space<vmem>>, vector<1x8x128xf32>,
    } else {
    }
    %c0 = arith.constant 0 : index
    %c0_1 = arith.constant 0 : index
    %c0_2 = arith.constant 0 : index
    %3 = vector.load %arg4[%c0, %c0_1, %c0_2] : memref<1x8x128xf32, #tpu.memory_space<vmem>>, vector<1x8x128xf32>
    %c0_3 = arith.constant 0 : index
    %c0_4 = arith.constant 0 : index
    %4 = vector.load %arg2[%c0_3, %c0_4] : memref<16x128xf32, #tpu.memory_space<vmem>>, vector<16x128xf32>
    %c0_5 = arith.constant 0 : index
    %c0_6 = arith.constant 0 : index
    %5 = vector.load %arg3[%c0_5, %c0_6] : memref<16x128xf32, #tpu.memory_space<vmem>>, vector<16x128xf32>
    %cst = arith.constant 0.000000e+00 : f32
    %cst_7 = arith.constant 1.000000e+00 : f32
    %6 = vector.broadcast %cst : f32 to vector<16x128xf32>
    %7 = arith.maximumf %6, %4 : vector<16x128xf32>
    %8 = vector.broadcast %cst_7 : f32 to vector<16x128xf32>
    %9 = arith.minimumf %8, %7 : vector<16x128xf32>
    %10 = math.log %9 : vector<16x128xf32>
    %cst_8 = arith.constant -1.000000e+02 : f32
    %11 = vector.broadcast %cst_8 : f32 to vector<16x128xf32>
    %12 = arith.maximumf %10, %11 : vector<16x128xf32>
    %cst_9 = arith.constant 1.000000e+00 : f32
    %13 = vector.broadcast %cst_9 : f32 to vector<16x128xf32>
    %14 = arith.subf %13, %9 : vector<16x128xf32>
    %15 = math.log %14 : vector<16x128xf32>
    %cst_10 = arith.constant -1.000000e+02 : f32
    %16 = vector.broadcast %cst_10 : f32 to vector<16x128xf32>
    %17 = arith.maximumf %15, %16 : vector<16x128xf32>
    %18 = arith.mulf %5, %12 : vector<16x128xf32>
    %cst_11 = arith.constant 1.000000e+00 : f32
    %19 = vector.broadcast %cst_11 : f32 to vector<16x128xf32>
    %20 = arith.subf %19, %5 : vector<16x128xf32>
    %21 = arith.mulf %20, %17 : vector<16x128xf32>
    %22 = arith.addf %18, %21 : vector<16x128xf32>
    %cst_12 = arith.constant 0.000000e+00 : f32
    %23 = vector.broadcast %cst_12 : f32 to vector<16x128xf32>
    %24 = arith.subf %23, %22 : vector<16x128xf32>
    %25 = vector.shape_cast %24 : vector<16x128xf32> to vector<2x8x128xf32>
    %cst_13 = arith.constant dense<0.000000e+00> : vector<8x128xf32>
    %26 = vector.multi_reduction <add>, %25, %cst_13 [0] : vector<2x8x128xf32> to vector<8x128xf32>
    %27 = vector.shape_cast %26 : vector<8x128xf32> to vector<1x8x128xf32>
    %28 = arith.addf %3, %27 : vector<1x8x128xf32>
    %c0_14 = arith.constant 0 : index
    %c0_15 = arith.constant 0 : index
    %c0_16 = arith.constant 0 : index
    %29 = vector.load %arg4[%c0_14, %c0_15, %c0_16] : memref<1x8x128xf32, #tpu.memory_space<vmem>>, vector<1x8x128xf32>
    tpu.vector_store %arg4[%c0_14, %c0_15, %c0_16], %28 {strides = array<i32>} : memref<1x8x128xf32, #tpu.memory_space<vmem>>, vector<1x8x128xf32>,
    return
  }
  func.func @transform_0(%arg0: i32, %arg1: i32) -> (i32, i32) {
    %c1_i32 = arith.constant 1 : i32
    %0 = arith.muli %arg0, %c1_i32 : i32
    %1 = arith.addi %0, %arg1 : i32
    %c0_i32 = arith.constant 0 : i32
    %2 = arith.minsi %1, %c0_i32 : i32
    %c0_i32_0 = arith.constant 0 : i32
    %c0_i32_1 = arith.constant 0 : i32
    return %2, %c0_i32_0 : i32, i32
  }
  func.func @transform_1(%arg0: i32, %arg1: i32) -> (i32, i32) {
    %c1_i32 = arith.constant 1 : i32
    %0 = arith.muli %arg0, %c1_i32 : i32
    %1 = arith.addi %0, %arg1 : i32
    %c0_i32 = arith.constant 0 : i32
    %2 = arith.minsi %1, %c0_i32 : i32
    %c0_i32_0 = arith.constant 0 : i32
    %c0_i32_1 = arith.constant 0 : i32
    return %2, %c0_i32_0 : i32, i32
  }
  func.func @transform_2(%arg0: i32, %arg1: i32) -> (i32, i32, i32) {
    %c0_i32 = arith.constant 0 : i32
    %c0_i32_0 = arith.constant 0 : i32
    %c0_i32_1 = arith.constant 0 : i32
    return %arg0, %c0_i32, %c0_i32_0 : i32, i32, i32
  }
}

</mosaic_0001>

<bundles_post_ra>
// kernel: bce_loss.1
= control target key start
LH: loop header
LB: loop body
LE: loop exit
PB: predicated region body
PF: predicated region fallthrough
CT: control target
= control target key end

     0   :  { %s171_s0 = inlined_call_operand.vmem [shape: f32[16,128], index: 0, kind: input, shape index: {}]   ;;  %s172_s1 = inlined_call_operand.vmem [shape: f32[16,128], index: 1, kind: input, shape index: {}]   ;;  %s173_s2 = inlined_call_operand.vmem [shape: f32[1,8,128], index: 2, kind: output, shape index: {}]  }
   0x1   :  { %v81_v0 = vld [vmem:[%s171_s0] sm:$0xff]  ;;  %v82_v1 = vld [vmem:[%s171_s0 + $0x8] sm:$0xff] }
   0x2   :  { %v85_v2 = vmax.f32 %v81_v0, 0.0  ;;  %v86_v3 = vmax.f32 %v82_v1, 0.0  ;;  %v83_v9 = vld [vmem:[%s172_s1] sm:$0xff]  ;;  %v84_v11 = vld [vmem:[%s172_s1 + $0x8] sm:$0xff] }
   0x3   :  { %v105_v18 = vsub.f32 1.0, %v83_v9  ;;  %v106_v21 = vsub.f32 1.0, %v84_v11 }
   0x4   :  { %v87_v4 = vmin.f32 %v85_v2, 1.0  ;;  %v88_v5 = vmin.f32 %v86_v3, 1.0 }
   0x6   :  { %133 = vlog2.f32 %v87_v4  ;;  %v95_v6 = vsub.f32 1.0, %v87_v4  ;;  %v96_v7 = vsub.f32 1.0, %v88_v5 }
   0x7   :  { %135 = vlog2.f32 %v88_v5 }
   0x8   :  { %137 = vlog2.f32 %v95_v6 }
   0x9   :  { %139 = vlog2.f32 %v96_v7 }
  0x10   :  { %v134_v8 = vpop.eup %133 }
  0x11   :  { %v136_v10 = vpop.eup %135  ;;  %v90_v12 = vmul.f32 0.6931472, %v134_v8 }
  0x12   :  { %v138_v13 = vpop.eup %137  ;;  %v92_v14 = vmul.f32 0.6931472, %v136_v10 }
  0x13   :  { %v140_v15 = vpop.eup %139  ;;  %v93_v16 = vmax.f32 %v90_v12, -100.0  ;;  %v98_v17 = vmul.f32 0.6931472, %v138_v13 }
  0x14   :  { %v94_v19 = vmax.f32 %v92_v14, -100.0  ;;  %v100_v20 = vmul.f32 0.6931472, %v140_v15 }
  0x15   :  { %v101_v22 = vmax.f32 %v98_v17, -100.0  ;;  %v103_v23 = vmul.f32 %v93_v16, %v83_v9 }
  0x16   :  { %v102_v24 = vmax.f32 %v100_v20, -100.0  ;;  %v104_v25 = vmul.f32 %v94_v19, %v84_v11 }
  0x17   :  { %v107_v26 = vmul.f32 %v105_v18, %v101_v22 }
  0x18   :  { %v108_v27 = vmul.f32 %v106_v21, %v102_v24 }
  0x19   :  { %v109_v28 = vadd.f32 %v107_v26, %v103_v23 }
  0x1a   :  { %v110_v29 = vadd.f32 %v108_v27, %v104_v25 }
  0x1b   :  { %v111_v30 = vsub.f32 0.0, %v109_v28 }
  0x1c   :  { %v112_v31 = vsub.f32 0.0, %v110_v29 }
  0x1e   :  { %v113_v32 = vadd.f32 %v112_v31, %v111_v30 }
  0x20   :  { %115 = vst [vmem:[%s173_s2] sm:$0xff] %v113_v32 }

</bundles_post_ra>
